<compile_context>
chip_gen: v6e
topology: v6e:2x2x1
jax: 0.10.0
libtpu: 0.0.40
codegen_flags: <defaults>
</compile_context>

<pallas_src>
import functools

import jax
import jax.numpy as jnp
from jax.experimental import pallas as pl
from jax.experimental.pallas import tpu as pltpu

LN_EPS = 1e-5
LANE = 128
SUBLANE = 8


def _round_up(x, m):
    return ((x + m - 1) // m) * m


# ----------------------------------------------------------------------------
# Fused kernel
# ----------------------------------------------------------------------------
def _make_fused_kernel(hidden_feats):
    """Fused kernel: len(hidden_feats) x (Linear+LN+SiLU) followed by a final Linear.

    Ref order: x, (w, packed_params) * n_layers, out.
    packed_params is an (8, out_pad) f32 slab: row0 = bias, row1 = gamma, row2 = beta.
    hidden_feats[i] = (real_out_dim, padded_out_dim) of hidden layer i.
    """

    def kernel(*refs):
        x_ref = refs[0]
        out_ref = refs[-1]
        h = x_ref[...]                      # bf16 activations between layers
        idx = 1
        for real_n, padded_n in hidden_feats:
            w_ref, p_ref = refs[idx], refs[idx + 1]
            idx += 2
            b = p_ref[0:1, :]
            g = p_ref[1:2, :]
            beta = p_ref[2:3, :]
            # Linear: bf16 x bf16 on the MXU, f32 accumulation; bias add in f32.
            y = jnp.dot(h, w_ref[...], preferred_element_type=jnp.float32) + b
            # Two-pass LayerNorm over the REAL features. Padded lanes of y are
            # exactly 0 (zero-padded weight columns / bias) so the plain sum is
            # the real-feature sum; the centered term is masked so padding never
            # pollutes the variance (no E[y^2]-mean^2 cancellation).
            inv_n = 1.0 / float(real_n)
            mean = jnp.sum(y, axis=-1, keepdims=True) * inv_n
            d = y - mean
            if real_n != padded_n:
                lane = jax.lax.broadcasted_iota(jnp.int32, y.shape, 1)
                d = jnp.where(lane < real_n, d, 0.0)
            var = jnp.sum(d * d, axis=-1, keepdims=True) * inv_n
            yn = d * jax.lax.rsqrt(var + LN_EPS)
            yn = yn * g + beta                        # padded lanes -> 0 (g=beta=0)
            # SiLU via a single tanh (one EUP push): silu(x) = 0.5*x*(tanh(x/2)+1).
            act = 0.5 * yn * (jnp.tanh(0.5 * yn) + 1.0)
            h = act.astype(jnp.bfloat16)              # bf16 inter-layer activations
        # Final Linear (Dropout is identity at inference; no LN / activation).
        w_ref, p_ref = refs[idx], refs[idx + 1]
        y = jnp.dot(h, w_ref[...], preferred_element_type=jnp.float32) + p_ref[0:1, :]
        out_ref[...] = y.astype(out_ref.dtype)

    return kernel


# ----------------------------------------------------------------------------
# One-time parameter preparation (hoisted out of the forward pass)
# ----------------------------------------------------------------------------
def prepare_params(params):
    """Convert PyTorch-layout params into kernel-ready, padded, transposed arrays.

    params: list of (W (out,in), b (out,), gamma (out,)|None, beta (out,)|None).
    Weights -> (in_pad, out_pad) bf16 (transposed, zero-padded so every feature
    dim -- including the input dim -- is a multiple of 128 lanes). Per-layer
    bias/gamma/beta are packed into a single (8, out_pad) f32 slab.
    """
    n = len(params)
    flat = []
    hidden_feats = []
    in_dim = params[0][0].shape[1]
    in_pad = _round_up(in_dim, LANE)           # lane-dense x / first-matmul K
    prev_real, prev_pad = in_dim, in_pad
    for w, b, gamma, beta in params:
        out_dim, cur_in = w.shape
        assert cur_in == prev_real, "layer sizes do not chain"
        out_pad = _round_up(out_dim, LANE)
        w_t = jnp.transpose(w)                                   # (in, out)
        w_t = jnp.pad(w_t, ((0, prev_pad - cur_in), (0, out_pad - out_dim)))
        flat.append(w_t.astype(jnp.bfloat16))
        # Pack bias / gamma / beta into one (8, out_pad) f32 slab (rows 0..2).
        p = jnp.zeros((SUBLANE, out_pad), dtype=jnp.float32)
        p = p.at[0, :out_dim].set(b.astype(jnp.float32))
        if gamma is not None:                                    # hidden layer
            p = p.at[1, :out_dim].set(gamma.astype(jnp.float32))
            p = p.at[2, :out_dim].set(beta.astype(jnp.float32))
            hidden_feats.append((out_dim, out_pad))
        flat.append(p)
        prev_real, prev_pad = out_dim, out_pad
    meta = dict(n_hidden=n - 1, hidden_feats=tuple(hidden_feats),
                in_dim=in_dim, in_pad=in_pad,
                out_dim=prev_real, out_pad=prev_pad)
    return flat, meta


# ----------------------------------------------------------------------------
# Resident-parameter BlockSpecs (single-buffered when supported)
# ----------------------------------------------------------------------------
@functools.lru_cache(maxsize=None)
def _buffered_specs_supported():
    """Probe whether BlockSpec(pipeline_mode=pl.Buffered(1)) lowers on this backend."""
    try:
        def _copy(x_ref, o_ref):
            o_ref[...] = x_ref[...]
        spec = pl.BlockSpec((SUBLANE, LANE), lambda i: (0, 0),
                            pipeline_mode=pl.Buffered(1))
        fn = pl.pallas_call(
            _copy,
            out_shape=jax.ShapeDtypeStruct((SUBLANE, LANE), jnp.float32),
            grid_spec=pltpu.PrefetchScalarGridSpec(
                num_scalar_prefetch=0, grid=(1,),
                in_specs=[spec],
                out_specs=pl.BlockSpec((SUBLANE, LANE), lambda i: (0, 0))),
        )
        jax.jit(fn).lower(
            jax.ShapeDtypeStruct((SUBLANE, LANE), jnp.float32)).compile()
        return True
    except Exception:
        return False


def _resident_spec(shape):
    """Full-array block, constant index map. The block never changes across the
    batch grid, so single-buffering it (Buffered(1)) halves its VMEM cost."""
    idx_map = lambda i: (0, 0)
    if _buffered_specs_supported():
        return pl.BlockSpec(shape, idx_map, pipeline_mode=pl.Buffered(1))
    return pl.BlockSpec(shape, idx_map)        # fall back to default buffering


# ----------------------------------------------------------------------------
# Tiling / VMEM budgeting helpers
# ----------------------------------------------------------------------------
def _compute_tiling(batch, max_batch_tile):
    batch_pad = _round_up(batch, SUBLANE)
    tile_m = min(batch_pad, max_batch_tile)
    # v7x has 2 TensorCores; keep >= 2 grid steps (sharded by "parallel")
    # whenever the batch allows it.
    if batch_pad >= 2 * SUBLANE:
        tile_m = min(tile_m, max(SUBLANE, (batch_pad // 2) // SUBLANE * SUBLANE))
    batch_pad = _round_up(batch_pad, tile_m)
    return batch_pad, tile_m


def _vmem_limit_bytes(flat_params, tile_m, meta):
    in_pad, out_pad = meta["in_pad"], meta["out_pad"]
    # Conservative: count params twice in case single-buffering is not honored.
    param_bytes = 2 * sum(int(p.size) * p.dtype.itemsize for p in flat_params)
    feats = [in_pad, out_pad] + [pad for _, pad in meta["hidden_feats"]]
    act_bytes = 8 * tile_m * max(feats) * 4                         # f32 working set
    io_bytes = 2 * tile_m * in_pad * 2 + 2 * tile_m * out_pad * 4   # 2x-buffered x / out
    est = param_bytes + act_bytes + io_bytes + (4 << 20)            # + margin
    if est > (48 << 20):
        # TODO(synk): weight-streaming path (extra grid axis over hidden tiles or
        # pltpu.emit_pipeline over (K, N) weight tiles) for models whose resident
        # footprint exceeds v7x's 64 MiB VMEM.
        raise NotImplementedError(
            f"resident-weight MLPLN kernel needs ~{est >> 20} MiB VMEM; "
            "add weight streaming for this model size")
    return int(min(max(est, 32 << 20), 64 << 20))


# ----------------------------------------------------------------------------
# Forward pass: single fused pallas_call, batch-gridded
# ----------------------------------------------------------------------------
def mlpln_forward(x, flat_params, meta, *, max_batch_tile=512, slice_output=True):
    """max_batch_tile: sweep 256/512/1024 on v5e/v6e (VMEM permitting); the >=2
    grid-step cap keeps both v7x TensorCores busy for medium/large batches."""
    batch, in_dim = x.shape
    assert in_dim == meta["in_dim"]
    in_pad, out_pad = meta["in_pad"], meta["out_pad"]

    batch_pad, tile_m = _compute_tiling(batch, max_batch_tile)

    # bf16 x with lane padding: half the x DMA bytes; padded x columns multiply
    # zero-padded weight rows, so the math is unchanged.
    x = x.astype(jnp.bfloat16)
    if batch_pad != batch or in_pad != in_dim:
        x = jnp.pad(x, ((0, batch_pad - batch), (0, in_pad - in_dim)))

    kernel = _make_fused_kernel(meta["hidden_feats"])

    grid = (batch_pad // tile_m,)
    x_spec = pl.BlockSpec((tile_m, in_pad), lambda i: (i, 0))
    param_specs = [_resident_spec(p.shape) for p in flat_params]
    out_spec = pl.BlockSpec((tile_m, out_pad), lambda i: (i, 0))

    out_padded = pl.pallas_call(
        kernel,
        # Output dtype pinned to f32 (does not follow the bf16 x).
        out_shape=jax.ShapeDtypeStruct((batch_pad, out_pad), jnp.float32),
        grid_spec=pltpu.PrefetchScalarGridSpec(
            num_scalar_prefetch=0,
            grid=grid,
            in_specs=[x_spec] + param_specs,
            out_specs=out_spec,
        ),
        compiler_params=pltpu.CompilerParams(
            dimension_semantics=("parallel",),
            vmem_limit_bytes=_vmem_limit_bytes(flat_params, tile_m, meta)),
    )(x, *flat_params)

    if not slice_output:
        # Lane-dense padded slab; let the consumer slice lazily (saves the extra
        # HBM read/write of the padded columns in the mem-bound regime).
        return out_padded
    return out_padded[:batch, :meta["out_dim"]]


# ----------------------------------------------------------------------------
# Reference init + pure-JAX forward (ground truth for validation)
# ----------------------------------------------------------------------------
def init_params(key, sizes):
    """PyTorch-style init: U(-1/sqrt(fan_in), 1/sqrt(fan_in)); LN gamma=1, beta=0."""
    params = []
    n = len(sizes) - 1
    keys = jax.random.split(key, 2 * n)
    for i in range(n):
        fan_in, fan_out = sizes[i], sizes[i + 1]
        bound = 1.0 / (fan_in ** 0.5)
        w = jax.random.uniform(keys[2 * i], (fan_out, fan_in),
                               minval=-bound, maxval=bound, dtype=jnp.float32)
        b = jax.random.uniform(keys[2 * i + 1], (fan_out,),
                               minval=-bound, maxval=bound, dtype=jnp.float32)
        if i < n - 1:
            gamma = jnp.ones((fan_out,), dtype=jnp.float32)
            beta = jnp.zeros((fan_out,), dtype=jnp.float32)
        else:
            gamma, beta = None, None
        params.append((w, b, gamma, beta))
    return params


def _reference_forward(x, params):
    h = x
    n = len(params)
    for i, (w, b, gamma, beta) in enumerate(params):
        h = h @ w.T + b
        if i < n - 1:
            mean = jnp.mean(h, axis=-1, keepdims=True)
            var = jnp.mean((h - mean) ** 2, axis=-1, keepdims=True)
            h = (h - mean) * jax.lax.rsqrt(var + LN_EPS)
            h = h * gamma + beta
            h = h * jax.nn.sigmoid(h)
    return h


if __name__ == "__main__":
    key = jax.random.PRNGKey(0)
    k_x, k_p = jax.random.split(key)

    sizes = [32, 64, 64, 16]   # MLPLN(sizes): 2 x (Linear+LN+SiLU) + final Linear
    batch = 8

    x = jax.random.normal(k_x, (batch, sizes[0]), dtype=jnp.float32)
    params = init_params(k_p, sizes)
    flat_params, meta = prepare_params(params)   # one-time: transpose/pad/pack/bf16

    fwd = jax.jit(lambda xx, fp: mlpln_forward(xx, fp, meta))
    out = fwd(x, flat_params)
    jax.block_until_ready(out)

    assert out.shape == (batch, sizes[-1])
    assert out.dtype == jnp.float32
    assert bool(jnp.isfinite(out).all())

    ref = _reference_forward(x, params)          # f32 reference (module semantics)
    max_err = float(jnp.max(jnp.abs(out - ref)))
    ref_absmax = float(jnp.max(jnp.abs(ref)))
    # bf16 weights + bf16 activations -> relative + absolute tolerance.
    tol = 5e-2 * ref_absmax + 7.5e-2
    assert max_err < tol, f"max abs error {max_err} (tol {tol})"

    print("KERNEL_OK")
</pallas_src>

<mosaic_0001>
module attributes {stable_mosaic.version = 11 : i64} {
  func.func @kernel(%arg0: i32, %arg1: memref<8x128xbf16, #tpu.memory_space<vmem>>, %arg2: memref<128x128xbf16, #tpu.memory_space<vmem>>, %arg3: memref<8x128xf32, #tpu.memory_space<vmem>>, %arg4: memref<128x128xbf16, #tpu.memory_space<vmem>>, %arg5: memref<8x128xf32, #tpu.memory_space<vmem>>, %arg6: memref<128x128xbf16, #tpu.memory_space<vmem>>, %arg7: memref<8x128xf32, #tpu.memory_space<vmem>>, %arg8: memref<8x128xf32, #tpu.memory_space<vmem>>) attributes {dimension_semantics = [#tpu.dimension_semantics<parallel>], iteration_bounds = array<i64: 1>, scalar_prefetch = 0 : i64, scratch_operands = 0 : i64, tpu.core_type = #tpu.core_type<tc>, window_params = [{transform_indices = @transform_0, window_bounds = array<i64: 8, 128>}, {pipeline_mode = #tpu.pipeline_mode<synchronous>, transform_indices = @transform_1, window_bounds = array<i64: 128, 128>}, {pipeline_mode = #tpu.pipeline_mode<synchronous>, transform_indices = @transform_2, window_bounds = array<i64: 8, 128>}, {pipeline_mode = #tpu.pipeline_mode<synchronous>, transform_indices = @transform_3, window_bounds = array<i64: 128, 128>}, {pipeline_mode = #tpu.pipeline_mode<synchronous>, transform_indices = @transform_4, window_bounds = array<i64: 8, 128>}, {pipeline_mode = #tpu.pipeline_mode<synchronous>, transform_indices = @transform_5, window_bounds = array<i64: 128, 128>}, {pipeline_mode = #tpu.pipeline_mode<synchronous>, transform_indices = @transform_6, window_bounds = array<i64: 8, 128>}, {transform_indices = @transform_7, window_bounds = array<i64: 8, 128>}]} {
    %c0 = arith.constant 0 : index
    %c0_0 = arith.constant 0 : index
    %0 = vector.load %arg1[%c0, %c0_0] : memref<8x128xbf16, #tpu.memory_space<vmem>>, vector<8x128xbf16>
    %c0_1 = arith.constant 0 : index
    %c0_2 = arith.constant 0 : index
    %1 = vector.load %arg3[%c0_1, %c0_2] : memref<8x128xf32, #tpu.memory_space<vmem>>, vector<1x128xf32>
    %c1 = arith.constant 1 : index
    %c0_3 = arith.constant 0 : index
    %2 = vector.load %arg3[%c1, %c0_3] : memref<8x128xf32, #tpu.memory_space<vmem>>, vector<1x128xf32>
    %c2 = arith.constant 2 : index
    %c0_4 = arith.constant 0 : index
    %3 = vector.load %arg3[%c2, %c0_4] : memref<8x128xf32, #tpu.memory_space<vmem>>, vector<1x128xf32>
    %c0_5 = arith.constant 0 : index
    %c0_6 = arith.constant 0 : index
    %4 = vector.load %arg2[%c0_5, %c0_6] : memref<128x128xbf16, #tpu.memory_space<vmem>>, vector<128x128xbf16>
    %cst = arith.constant dense<0.000000e+00> : vector<8x128xf32>
    %5 = tpu.matmul %0, %4, %cst {dimension_numbers = #tpu.dot_dimension_numbers<[1], [0], [0], [1], [0, 0, 1, 1], [], []>} : vector<8x128xbf16>, vector<128x128xbf16>, vector<8x128xf32> -> vector<8x128xf32>
    %6 = vector.broadcast %1 : vector<1x128xf32> to vector<8x128xf32>
    %7 = arith.addf %5, %6 : vector<8x128xf32>
    %cst_7 = arith.constant dense<0.000000e+00> : vector<8xf32>
    %8 = vector.multi_reduction <add>, %7, %cst_7 [1] : vector<8x128xf32> to vector<8xf32>
    %9 = vector.shape_cast %8 : vector<8xf32> to vector<8x1xf32>
    %cst_8 = arith.constant 1.562500e-02 : f32
    %10 = vector.broadcast %cst_8 : f32 to vector<8x1xf32>
    %11 = arith.mulf %9, %10 : vector<8x1xf32>
    %12 = vector.broadcast %11 : vector<8x1xf32> to vector<8x128xf32>
    %13 = arith.subf %7, %12 : vector<8x128xf32>
    %14 = tpu.iota {dimensions = array<i32: 1>} : vector<8x128xi32>
    %c64_i32 = arith.constant 64 : i32
    %15 = vector.broadcast %c64_i32 : i32 to vector<8x128xi32>
    %16 = arith.cmpi slt, %14, %15 : vector<8x128xi32>
    %cst_9 = arith.constant 0.000000e+00 : f32
    %17 = vector.broadcast %cst_9 : f32 to vector<8x128xf32>
    %18 = arith.select %16, %13, %17 : vector<8x128xi1>, vector<8x128xf32>
    %19 = arith.mulf %18, %18 : vector<8x128xf32>
    %cst_10 = arith.constant dense<0.000000e+00> : vector<8xf32>
    %20 = vector.multi_reduction <add>, %19, %cst_10 [1] : vector<8x128xf32> to vector<8xf32>
    %21 = vector.shape_cast %20 : vector<8xf32> to vector<8x1xf32>
    %cst_11 = arith.constant 1.562500e-02 : f32
    %22 = vector.broadcast %cst_11 : f32 to vector<8x1xf32>
    %23 = arith.mulf %21, %22 : vector<8x1xf32>
    %cst_12 = arith.constant 9.99999974E-6 : f32
    %24 = vector.broadcast %cst_12 : f32 to vector<8x1xf32>
    %25 = arith.addf %23, %24 : vector<8x1xf32>
    %26 = math.rsqrt %25 : vector<8x1xf32>
    %27 = vector.broadcast %26 : vector<8x1xf32> to vector<8x128xf32>
    %28 = arith.mulf %18, %27 : vector<8x128xf32>
    %29 = vector.broadcast %2 : vector<1x128xf32> to vector<8x128xf32>
    %30 = arith.mulf %28, %29 : vector<8x128xf32>
    %31 = vector.broadcast %3 : vector<1x128xf32> to vector<8x128xf32>
    %32 = arith.addf %30, %31 : vector<8x128xf32>
    %cst_13 = arith.constant 5.000000e-01 : f32
    %33 = vector.broadcast %cst_13 : f32 to vector<8x128xf32>
    %34 = arith.mulf %33, %32 : vector<8x128xf32>
    %cst_14 = arith.constant 5.000000e-01 : f32
    %35 = vector.broadcast %cst_14 : f32 to vector<8x128xf32>
    %36 = arith.mulf %35, %32 : vector<8x128xf32>
    %37 = math.tanh %36 : vector<8x128xf32>
    %cst_15 = arith.constant 1.000000e+00 : f32
    %38 = vector.broadcast %cst_15 : f32 to vector<8x128xf32>
    %39 = arith.addf %37, %38 : vector<8x128xf32>
    %40 = arith.mulf %34, %39 : vector<8x128xf32>
    %41 = arith.truncf %40 : vector<8x128xf32> to vector<8x128xbf16>
    %c0_16 = arith.constant 0 : index
    %c0_17 = arith.constant 0 : index
    %42 = vector.load %arg5[%c0_16, %c0_17] : memref<8x128xf32, #tpu.memory_space<vmem>>, vector<1x128xf32>
    %c1_18 = arith.constant 1 : index
    %c0_19 = arith.constant 0 : index
    %43 = vector.load %arg5[%c1_18, %c0_19] : memref<8x128xf32, #tpu.memory_space<vmem>>, vector<1x128xf32>
    %c2_20 = arith.constant 2 : index
    %c0_21 = arith.constant 0 : index
    %44 = vector.load %arg5[%c2_20, %c0_21] : memref<8x128xf32, #tpu.memory_space<vmem>>, vector<1x128xf32>
    %c0_22 = arith.constant 0 : index
    %c0_23 = arith.constant 0 : index
    %45 = vector.load %arg4[%c0_22, %c0_23] : memref<128x128xbf16, #tpu.memory_space<vmem>>, vector<128x128xbf16>
    %cst_24 = arith.constant dense<0.000000e+00> : vector<8x128xf32>
    %46 = tpu.matmul %41, %45, %cst_24 {dimension_numbers = #tpu.dot_dimension_numbers<[1], [0], [0], [1], [0, 0, 1, 1], [], []>} : vector<8x128xbf16>, vector<128x128xbf16>, vector<8x128xf32> -> vector<8x128xf32>
    %47 = vector.broadcast %42 : vector<1x128xf32> to vector<8x128xf32>
    %48 = arith.addf %46, %47 : vector<8x128xf32>
    %cst_25 = arith.constant dense<0.000000e+00> : vector<8xf32>
    %49 = vector.multi_reduction <add>, %48, %cst_25 [1] : vector<8x128xf32> to vector<8xf32>
    %50 = vector.shape_cast %49 : vector<8xf32> to vector<8x1xf32>
    %cst_26 = arith.constant 1.562500e-02 : f32
    %51 = vector.broadcast %cst_26 : f32 to vector<8x1xf32>
    %52 = arith.mulf %50, %51 : vector<8x1xf32>
    %53 = vector.broadcast %52 : vector<8x1xf32> to vector<8x128xf32>
    %54 = arith.subf %48, %53 : vector<8x128xf32>
    %55 = tpu.iota {dimensions = array<i32: 1>} : vector<8x128xi32>
    %c64_i32_27 = arith.constant 64 : i32
    %56 = vector.broadcast %c64_i32_27 : i32 to vector<8x128xi32>
    %57 = arith.cmpi slt, %55, %56 : vector<8x128xi32>
    %cst_28 = arith.constant 0.000000e+00 : f32
    %58 = vector.broadcast %cst_28 : f32 to vector<8x128xf32>
    %59 = arith.select %57, %54, %58 : vector<8x128xi1>, vector<8x128xf32>
    %60 = arith.mulf %59, %59 : vector<8x128xf32>
    %cst_29 = arith.constant dense<0.000000e+00> : vector<8xf32>
    %61 = vector.multi_reduction <add>, %60, %cst_29 [1] : vector<8x128xf32> to vector<8xf32>
    %62 = vector.shape_cast %61 : vector<8xf32> to vector<8x1xf32>
    %cst_30 = arith.constant 1.562500e-02 : f32
    %63 = vector.broadcast %cst_30 : f32 to vector<8x1xf32>
    %64 = arith.mulf %62, %63 : vector<8x1xf32>
    %cst_31 = arith.constant 9.99999974E-6 : f32
    %65 = vector.broadcast %cst_31 : f32 to vector<8x1xf32>
    %66 = arith.addf %64, %65 : vector<8x1xf32>
    %67 = math.rsqrt %66 : vector<8x1xf32>
    %68 = vector.broadcast %67 : vector<8x1xf32> to vector<8x128xf32>
    %69 = arith.mulf %59, %68 : vector<8x128xf32>
    %70 = vector.broadcast %43 : vector<1x128xf32> to vector<8x128xf32>
    %71 = arith.mulf %69, %70 : vector<8x128xf32>
    %72 = vector.broadcast %44 : vector<1x128xf32> to vector<8x128xf32>
    %73 = arith.addf %71, %72 : vector<8x128xf32>
    %cst_32 = arith.constant 5.000000e-01 : f32
    %74 = vector.broadcast %cst_32 : f32 to vector<8x128xf32>
    %75 = arith.mulf %74, %73 : vector<8x128xf32>
    %cst_33 = arith.constant 5.000000e-01 : f32
    %76 = vector.broadcast %cst_33 : f32 to vector<8x128xf32>
    %77 = arith.mulf %76, %73 : vector<8x128xf32>
    %78 = math.tanh %77 : vector<8x128xf32>
    %cst_34 = arith.constant 1.000000e+00 : f32
    %79 = vector.broadcast %cst_34 : f32 to vector<8x128xf32>
    %80 = arith.addf %78, %79 : vector<8x128xf32>
    %81 = arith.mulf %75, %80 : vector<8x128xf32>
    %82 = arith.truncf %81 : vector<8x128xf32> to vector<8x128xbf16>
    %c0_35 = arith.constant 0 : index
    %c0_36 = arith.constant 0 : index
    %83 = vector.load %arg6[%c0_35, %c0_36] : memref<128x128xbf16, #tpu.memory_space<vmem>>, vector<128x128xbf16>
    %cst_37 = arith.constant dense<0.000000e+00> : vector<8x128xf32>
    %84 = tpu.matmul %82, %83, %cst_37 {dimension_numbers = #tpu.dot_dimension_numbers<[1], [0], [0], [1], [0, 0, 1, 1], [], []>} : vector<8x128xbf16>, vector<128x128xbf16>, vector<8x128xf32> -> vector<8x128xf32>
    %c0_38 = arith.constant 0 : index
    %c0_39 = arith.constant 0 : index
    %85 = vector.load %arg7[%c0_38, %c0_39] : memref<8x128xf32, #tpu.memory_space<vmem>>, vector<1x128xf32>
    %86 = vector.broadcast %85 : vector<1x128xf32> to vector<8x128xf32>
    %87 = arith.addf %84, %86 : vector<8x128xf32>
    %c0_40 = arith.constant 0 : index
    %c0_41 = arith.constant 0 : index
    %88 = vector.load %arg8[%c0_40, %c0_41] : memref<8x128xf32, #tpu.memory_space<vmem>>, vector<8x128xf32>
    tpu.vector_store %arg8[%c0_40, %c0_41], %87 {strides = array<i32>} : memref<8x128xf32, #tpu.memory_space<vmem>>, vector<8x128xf32>,
    return
  }
  func.func @transform_0(%arg0: i32) -> (i32, i32) {
    %c0_i32 = arith.constant 0 : i32
    %c0_i32_0 = arith.constant 0 : i32
    return %arg0, %c0_i32 : i32, i32
  }
  func.func @transform_1(%arg0: i32) -> (i32, i32) {
    %c0_i32 = arith.constant 0 : i32
    %c0_i32_0 = arith.constant 0 : i32
    %c0_i32_1 = arith.constant 0 : i32
    return %c0_i32, %c0_i32_0 : i32, i32
  }
  func.func @transform_2(%arg0: i32) -> (i32, i32) {
    %c0_i32 = arith.constant 0 : i32
    %c0_i32_0 = arith.constant 0 : i32
    %c0_i32_1 = arith.constant 0 : i32
    return %c0_i32, %c0_i32_0 : i32, i32
  }
  func.func @transform_3(%arg0: i32) -> (i32, i32) {
    %c0_i32 = arith.constant 0 : i32
    %c0_i32_0 = arith.constant 0 : i32
    %c0_i32_1 = arith.constant 0 : i32
    return %c0_i32, %c0_i32_0 : i32, i32
  }
  func.func @transform_4(%arg0: i32) -> (i32, i32) {
    %c0_i32 = arith.constant 0 : i32
    %c0_i32_0 = arith.constant 0 : i32
    %c0_i32_1 = arith.constant 0 : i32
    return %c0_i32, %c0_i32_0 : i32, i32
  }
  func.func @transform_5(%arg0: i32) -> (i32, i32) {
    %c0_i32 = arith.constant 0 : i32
    %c0_i32_0 = arith.constant 0 : i32
    %c0_i32_1 = arith.constant 0 : i32
    return %c0_i32, %c0_i32_0 : i32, i32
  }
  func.func @transform_6(%arg0: i32) -> (i32, i32) {
    %c0_i32 = arith.constant 0 : i32
    %c0_i32_0 = arith.constant 0 : i32
    %c0_i32_1 = arith.constant 0 : i32
    return %c0_i32, %c0_i32_0 : i32, i32
  }
  func.func @transform_7(%arg0: i32) -> (i32, i32) {
    %c0_i32 = arith.constant 0 : i32
    %c0_i32_0 = arith.constant 0 : i32
    return %arg0, %c0_i32 : i32, i32
  }
}

</mosaic_0001>

<bundles_post_ra>
// kernel: _lambda_.1
= control target key start
LH: loop header
LB: loop body
LE: loop exit
PB: predicated region body
PF: predicated region fallthrough
CT: control target
= control target key end

     0   :  { %12 = vsyncpa [#allocation3], 0  ;;  %s835_s0 = inlined_call_operand.vmem [shape: bf16[8,128], index: 0, kind: input, shape index: {}]   ;;  %s836_s1 = inlined_call_operand.hbm [shape: bf16[128,128], index: 1, kind: input, shape index: {}]   ;;  %s837_s2 = inlined_call_operand.vmem [shape: f32[8,128], index: 2, kind: input, shape index: {}]   ;;  %s838_s3 = inlined_call_operand.hbm [shape: bf16[128,128], index: 3, kind: input, shape index: {}]   ;;  %s839_s4 = inlined_call_operand.vmem [shape: f32[8,128], index: 4, kind: input, shape index: {}]   ;;  %s840_s5 = inlined_call_operand.hbm [shape: bf16[128,128], index: 5, kind: input, shape index: {}]   ;;  %s841_s6 = inlined_call_operand.vmem [shape: f32[8,128], index: 6, kind: input, shape index: {}]   ;;  %s842_s7 = inlined_call_operand.hbm [shape: f32[8,128], index: 7, kind: output, shape index: {}]  }
   0x1   :  { %13 = vsyncpa [#allocation6], 0 }
   0x2   :  { %14 = vsyncpa [#allocation4], 0  ;;  %s719_s24 = smov [#allocation5]   ;;  %s720_s26 = smov [#allocation2]  }
   0x3   :  { %s36_s25 = sshll.u32 %s719_s24, 4  ;;  %s22_s27 = sshll.u32 %s720_s26, 4  ;;  %s37_s25 = int_to_ptr.vmem [resolvable:$true] %s36_s25  ;;  %s23_s27 = int_to_ptr.vmem [resolvable:$true] %s22_s27 }
   0x4   :  { %s641_s28 = scalar_lea.vmem %s37_s25, 1024  ;;  %p646_p1 = scmp.lt.s32.totalorder %s37_s25, %s37_s25 }
   0x5   :  { %p642_p0 = scmp.ne.s32.totalorder %s37_s25, %s641_s28  ;;  %p647_p2 = scmp.lt.s32.totalorder %s641_s28, %s641_s28 }
   0x7   :  { %p648_p3 = por %p647_p2, %p646_p1 }
   0x9   :  { %p649_p4 = pnand %p648_p3, %p642_p0 }
   0xb   :  { %652 = shalt.err (!%p649_p4)
}
   0xc   :  { %s721_s29 = smov 64   ;;  %s722_s30 = smov 4  }
   0xd   :  { %42 = dma.hbm_to_vmem [thread:$0]  %s838_s3, 1024, %s37_s25, [#allocation6], %s721_s29, %s721_s29, %s722_s30  }
   0xe   :  { %s661_s10 = scalar_lea.vmem %s23_s27, 1024  ;;  %p666_p6 = scmp.lt.s32.totalorder %s23_s27, %s23_s27 }
   0xf   :  { %p662_p5 = scmp.ne.s32.totalorder %s23_s27, %s661_s10  ;;  %p667_p7 = scmp.lt.s32.totalorder %s661_s10, %s661_s10 }
  0x11   :  { %p668_p8 = por %p667_p7, %p666_p6 }
  0x13   :  { %p669_p9 = pnand %p668_p8, %p662_p5 }
  0x15   :  { %672 = shalt.err (!%p669_p9)
}
  0x16   :  { %28 = dma.hbm_to_vmem [thread:$0]  %s836_s1, 1024, %s23_s27, [#allocation3], %s721_s29, %s721_s29, %s722_s30  }
  0x17   :  { %s723_s13 = smov [#allocation7]  }
  0x18   :  { %s50_s14 = sshll.u32 %s723_s13, 4  ;;  %s51_s14 = int_to_ptr.vmem [resolvable:$true] %s50_s14 }
  0x19   :  { %s681_s15 = scalar_lea.vmem %s51_s14, 1024  ;;  %p686_p11 = scmp.lt.s32.totalorder %s51_s14, %s51_s14 }
  0x1a   :  { %p682_p10 = scmp.ne.s32.totalorder %s51_s14, %s681_s15  ;;  %p687_p12 = scmp.lt.s32.totalorder %s681_s15, %s681_s15 }
  0x1c   :  { %p688_p13 = por %p687_p12, %p686_p11 }
  0x1e   :  { %p689_p0 = pnand %p688_p13, %p682_p10 }
  0x20   :  { %692 = shalt.err (!%p689_p0)
}
  0x21   :  { %56 = dma.hbm_to_vmem [thread:$0]  %s840_s5, 1024, %s51_s14, [#allocation6], %s721_s29, %s721_s29, %s722_s30  }
  0x22   :  { %713 = dma.done.wait [#allocation3], 1024  }
  0x23   :  { %714 = vsyncadd [#allocation3], 4294966272 }
  0x24   :  { %715 = dma.done.wait [#allocation6], 2048  }
  0x25   :  { %716 = vsyncadd [#allocation6], 4294965248  ;;  %v724_v0 = vmov 0.0   ;;  %vm725_vm0 = vmmov 0   ;;  %v601_v1 = vld [vmem:[#allocation2 + $0x38] sm:$0xff]   ;;  %v602_v2 = vld [vmem:[#allocation2 + $0x30] sm:$0xff]   ;;  %v185_v16 = vlaneseq }
  0x26   :  { %533 = vmatprep.subr.bf16.mxu0 %v724_v0  ;;  %549 = vmatprep.mubr.msk.bf16.mxu0 %vm725_vm0, %v724_v0  ;;  %v603_v3 = vld [vmem:[#allocation2 + $0x28] sm:$0xff]   ;;  %v604_v4 = vld [vmem:[#allocation2 + $0x20] sm:$0xff]   ;;  %v605_v5 = vld [vmem:[#allocation2 + $0x18] sm:$0xff]   ;;  %s726_s29 = smov [#allocation8]  }
  0x27   :  { %553 = vmatprep.subr.bf16.mxu1 %v724_v0  ;;  %569 = vmatprep.mubr.msk.bf16.mxu1 %vm725_vm0, %v724_v0  ;;  %v606_v6 = vld [vmem:[#allocation2 + $0x10] sm:$0xff]   ;;  %v607_v7 = vld [vmem:[#allocation2 + $0x8] sm:$0xff]   ;;  %v608_v8 = vld [vmem:[#allocation2] sm:$0xff]   ;;  %v186_v17 = vand.u32 127, %v185_v16  ;;  %s465_s30 = sshll.u32 %s726_s29, 4  ;;  %s466_s30 = int_to_ptr.vmem [resolvable:$true] %s465_s30 }
  0x28   :  { %534 = vmatpush3.bf16.msra.mxu0 %v601_v1  ;;  %v69_v9 = vld [vmem:[%s835_s0] sm:$0xf]  ;;  %v609_v23 = vld [vmem:[#allocation5 + $0x38] sm:$0xff]   ;;  %v610_v24 = vld [vmem:[#allocation5 + $0x30] sm:$0xff]   ;;  %p698_p2 = scmp.lt.s32.totalorder %s466_s30, %s466_s30 }
  0x29   :  { %535 = vmatprep.subr.bf16.mxu0 %v724_v0  ;;  %v475_v10 = vld [vmem:[%s837_s2] ss:$0 sm:$0xff]  ;;  %vm187_vm1 = vcmp.lt.s32.totalorder %v186_v17, 64  ;;  %554 = vmatpush3.bf16.msra.mxu1 %v609_v23  ;;  %v611_v25 = vld [vmem:[#allocation5 + $0x28] sm:$0xff]   ;;  %v613_v27 = vld [vmem:[#allocation5 + $0x18] sm:$0xff]  }
  0x2a   :  { %555 = vmatprep.subr.bf16.mxu1 %v724_v0  ;;  %v612_v26 = vld [vmem:[#allocation5 + $0x20] sm:$0xff]   ;;  %v614_v28 = vld [vmem:[#allocation5 + $0x10] sm:$0xff]   ;;  %v615_v29 = vld [vmem:[#allocation5 + $0x8] sm:$0xff]  }
  0x2b   :  { %v616_v30 = vld [vmem:[#allocation5] sm:$0xff]   ;;  %v617_v56 = vld [vmem:[#allocation7 + $0x38] sm:$0xff]   ;;  %v618_v57 = vld [vmem:[#allocation7 + $0x30] sm:$0xff]  }
  0x2c   :  { %536 = vmatpush3.bf16.msra.mxu0 %v602_v2  ;;  %v484_v35 = vld [vmem:[%s837_s2 + $0x1] ss:$0 sm:$0xff]  ;;  %v485_v37 = vld [vmem:[%s837_s2 + $0x2] ss:$0 sm:$0xff]  ;;  %v486_v45 = vld [vmem:[%s839_s4] ss:$0 sm:$0xff] }
  0x2d   :  { %537 = vmatprep.subr.bf16.mxu0 %v724_v0  ;;  %556 = vmatpush3.bf16.msra.mxu1 %v610_v24  ;;  %v619_v58 = vld [vmem:[#allocation7 + $0x28] sm:$0xff]   ;;  %v620_v59 = vld [vmem:[#allocation7 + $0x20] sm:$0xff]   ;;  %v621_v60 = vld [vmem:[#allocation7 + $0x18] sm:$0xff]  }
  0x2e   :  { %557 = vmatprep.subr.bf16.mxu1 %v724_v0  ;;  %v622_v61 = vld [vmem:[#allocation7 + $0x10] sm:$0xff]   ;;  %v623_v62 = vld [vmem:[#allocation7 + $0x8] sm:$0xff]   ;;  %v624_v63 = vld [vmem:[#allocation7] sm:$0xff]  }
  0x30   :  { %538 = vmatpush3.bf16.msra.mxu0 %v603_v3 }
  0x31   :  { %539 = vmatprep.subr.bf16.mxu0 %v724_v0  ;;  %558 = vmatpush3.bf16.msra.mxu1 %v611_v25 }
  0x32   :  { %559 = vmatprep.subr.bf16.mxu1 %v724_v0 }
  0x34   :  { %540 = vmatpush3.bf16.msra.mxu0 %v604_v4 }
  0x35   :  { %541 = vmatprep.subr.bf16.mxu0 %v724_v0  ;;  %560 = vmatpush3.bf16.msra.mxu1 %v612_v26 }
  0x36   :  { %561 = vmatprep.subr.bf16.mxu1 %v724_v0 }
  0x38   :  { %542 = vmatpush3.bf16.msra.mxu0 %v605_v5  ;;  %v495_v5 = vld [vmem:[%s839_s4 + $0x1] ss:$0 sm:$0xff] }
  0x39   :  { %543 = vmatprep.subr.bf16.mxu0 %v724_v0  ;;  %562 = vmatpush3.bf16.msra.mxu1 %v613_v27 }
  0x3a   :  { %563 = vmatprep.subr.bf16.mxu1 %v724_v0 }
  0x3c   :  { %544 = vmatpush3.bf16.msra.mxu0 %v606_v6 }
  0x3d   :  { %545 = vmatprep.subr.bf16.mxu0 %v724_v0  ;;  %564 = vmatpush3.bf16.msra.mxu1 %v614_v28 }
  0x3e   :  { %565 = vmatprep.subr.bf16.mxu1 %v724_v0 }
  0x40   :  { %546 = vmatpush3.bf16.msra.mxu0 %v607_v7  ;;  %v496_v7 = vld [vmem:[%s839_s4 + $0x2] ss:$0 sm:$0xff]  ;;  %s693_s4 = scalar_lea.vmem %s466_s30, 128 }
  0x41   :  { %547 = vmatprep.subr.bf16.mxu0 %v724_v0  ;;  %566 = vmatpush3.bf16.msra.mxu1 %v615_v29  ;;  %p694_p1 = scmp.ne.s32.totalorder %s466_s30, %s693_s4  ;;  %p699_p3 = scmp.lt.s32.totalorder %s693_s4, %s693_s4 }
  0x42   :  { %567 = vmatprep.subr.bf16.mxu1 %v724_v0 }
  0x43   :  { %p700_p4 = por %p699_p3, %p698_p2 }
  0x44   :  { %548 = vmatpush3.bf16.msra.mxu0 %v608_v8 }
  0x45   :  { %573 = vmatprep.subr.bf16.mxu0 %v724_v0  ;;  %568 = vmatpush3.bf16.msra.mxu1 %v616_v30  ;;  %p701_p5 = pnand %p700_p4, %p694_p1 }
  0x47   :  { %550 = vmatmul.mubr.bf16.vlgmr.msra.gmra.mxu0 %v69_v9 }
  0x48   :  { %589 = vmatprep.mubr.msk.bf16.mxu0 %vm725_vm0, %v724_v0  ;;  %574 = vmatpush3.bf16.msra.mxu0 %v617_v56 }
  0x49   :  { %575 = vmatprep.subr.bf16.mxu0 %v724_v0 }
  0x4c   :  { %576 = vmatpush3.bf16.msra.mxu0 %v618_v57 }
  0x4d   :  { %577 = vmatprep.subr.bf16.mxu0 %v724_v0 }
  0x50   :  { %578 = vmatpush3.bf16.msra.mxu0 %v619_v58 }
  0x51   :  { %579 = vmatprep.subr.bf16.mxu0 %v724_v0 }
  0x54   :  { %580 = vmatpush3.bf16.msra.mxu0 %v620_v59 }
  0x55   :  { %581 = vmatprep.subr.bf16.mxu0 %v724_v0 }
  0x58   :  { %582 = vmatpush3.bf16.msra.mxu0 %v621_v60 }
  0x59   :  { %583 = vmatprep.subr.bf16.mxu0 %v724_v0 }
  0x5c   :  { %584 = vmatpush3.bf16.msra.mxu0 %v622_v61 }
  0x5d   :  { %585 = vmatprep.subr.bf16.mxu0 %v724_v0 }
  0x60   :  { %586 = vmatpush3.bf16.msra.mxu0 %v623_v62 }
  0x61   :  { %587 = vmatprep.subr.bf16.mxu0 %v724_v0 }
  0x64   :  { %588 = vmatpush3.bf16.msra.mxu0 %v624_v63 }
 0x107   :  { %v175_v11 = vpop.f32.mrf.mxu0 }
 0x108   :  { %v176_v12 = vadd.f32 %v475_v10, %v175_v11 }
 0x109   :  { %v551_v13 = vpop.f32.mrf.mxu0 }
 0x10a   :  { %181 = vadd.xlane.f32.xlu0 %v176_v12 }
 0x10b   :  { %v178_v14 = vpop.f32.mrf.mxu0 }
 0x10c   :  { %v497_v14 = vld [vmem:[%s841_s6] ss:$0 sm:$0xff] }
 0x10d   :  { %v552_v15 = vpop.f32.mrf.mxu0 }
 0x193   :  { %v182_v18 = vpop.xlane.xlu0 %181 }
 0x194   :  { %v183_v19 = vmul.f32 0.015625, %v182_v18 }
 0x196   :  { %v184_v20 = vsub.f32 %v176_v12, %v183_v19 }
 0x198   :  { %v188_v21 = vsel %vm187_vm1, %v184_v20, 0.0 }
 0x199   :  { %v189_v22 = vmul.f32 %v188_v21, %v188_v21 }
 0x19b   :  { %190 = vadd.xlane.f32.xlu0 %v189_v22 }
 0x224   :  { %v191_v31 = vpop.xlane.xlu0 %190 }
 0x225   :  { %v192_v32 = vmul.f32 0.015625, %v191_v31 }
 0x227   :  { %v193_v33 = vadd.f32 1e-05, %v192_v32 }
 0x229   :  { %625 = vrsqrt.f32 %v193_v33 }
 0x236   :  { %v626_v34 = vpop.eup %625 }
 0x237   :  { %v195_v36 = vmul.f32 %v626_v34, %v188_v21 }
 0x239   :  { %v200_v38 = vmul.f32 %v484_v35, %v195_v36 }
 0x23b   :  { %v205_v39 = vadd.f32 %v485_v37, %v200_v38 }
 0x23d   :  { %v206_v40 = vmul.f32 0.5, %v205_v39 }
 0x23f   :  { %627 = vtanh.f32 %v206_v40 }
 0x24c   :  { %v628_v41 = vpop.eup %627 }
 0x24d   :  { %v208_v42 = vadd.f32 1.0, %v628_v41 }
 0x24f   :  { %v209_v43 = vmul.f32 %v208_v42, %v206_v40 }
 0x251   :  { %v210_v44 = vpack.c.bf16 %v209_v43, %v209_v43 }
 0x253   :  { %570 = vmatmul.mubr.bf16.vlgmr.msra.gmra.mxu1 %v210_v44 }
 0x313   :  { %v316_v46 = vpop.f32.mrf.mxu1 }
 0x314   :  { %v317_v47 = vadd.f32 %v486_v45, %v316_v46 }
 0x315   :  { %v571_v48 = vpop.f32.mrf.mxu1 }
 0x316   :  { %322 = vadd.xlane.f32.xlu1 %v317_v47 }
 0x317   :  { %v319_v49 = vpop.f32.mrf.mxu1 }
 0x319   :  { %v572_v50 = vpop.f32.mrf.mxu1 }
 0x39f   :  { %v323_v51 = vpop.xlane.xlu1 %322 }
 0x3a0   :  { %v324_v52 = vmul.f32 0.015625, %v323_v51 }
 0x3a2   :  { %v325_v53 = vsub.f32 %v317_v47, %v324_v52 }
 0x3a4   :  { %v326_v54 = vsel %vm187_vm1, %v325_v53, 0.0 }
 0x3a5   :  { %v327_v55 = vmul.f32 %v326_v54, %v326_v54 }
 0x3a7   :  { %328 = vadd.xlane.f32.xlu1 %v327_v55 }
 0x430   :  { %v329_v1 = vpop.xlane.xlu1 %328 }
 0x431   :  { %v330_v2 = vmul.f32 0.015625, %v329_v1 }
 0x433   :  { %v331_v3 = vadd.f32 1e-05, %v330_v2 }
 0x435   :  { %629 = vrsqrt.f32 %v331_v3 }
 0x442   :  { %v630_v4 = vpop.eup %629 }
 0x443   :  { %v333_v6 = vmul.f32 %v630_v4, %v326_v54 }
 0x445   :  { %v338_v8 = vmul.f32 %v495_v5, %v333_v6 }
 0x447   :  { %v343_v9 = vadd.f32 %v496_v7, %v338_v8 }
 0x449   :  { %v344_v10 = vmul.f32 0.5, %v343_v9 }
 0x44b   :  { %631 = vtanh.f32 %v344_v10 }
 0x458   :  { %v632_v0 = vpop.eup %631 }
 0x459   :  { %v346_v11 = vadd.f32 1.0, %v632_v0 }
 0x45b   :  { %v347_v12 = vmul.f32 %v346_v11, %v344_v10 }
 0x45d   :  { %v348_v13 = vpack.c.bf16 %v347_v12, %v347_v12 }
 0x45f   :  { %590 = vmatmul.mubr.bf16.vlgmr.msra.gmra.mxu0 %v348_v13 }
 0x51f   :  { %v452_v15 = vpop.f32.mrf.mxu0 }
 0x520   :  { %v453_v16 = vadd.f32 %v497_v14, %v452_v15 }
 0x521   :  { %v591_v17 = vpop.f32.mrf.mxu0 }
 0x522   :  { %458 = vst [vmem:[#allocation8] sm:$0xff] %v453_v16 }
 0x523   :  { %v455_v18 = vpop.f32.mrf.mxu0 }
 0x524   :  { %704 = shalt.err (!%p701_p5)
}
 0x525   :  { %468 = dma.vmem_to_hbm [thread:$0]  %s466_s30, 128, %s842_s7, [#allocation4]   ;;  %v592_v19 = vpop.f32.mrf.mxu0 }
 0x526   :  { %717 = dma.done.wait [#allocation4], 128  }
 0x527   :  { %718 = vsyncadd [#allocation4], 4294967168 }
 0x528   :  { %472 = vsyncpa [#allocation3], 1 }
 0x529   :  { %473 = vsyncpa [#allocation6], 1 }
 0x52a   :  { %474 = vsyncpa [#allocation4], 1 }

</bundles_post_ra>
